<compile_context>
chip_gen: v7x
topology: tpu7x:2x2x1
jax: 0.10.0
libtpu: 0.0.40
codegen_flags: <defaults>
</compile_context>

<pallas_src>
import jax
import jax.numpy as jnp
from jax.experimental import pallas as pl
from jax.experimental.pallas import tpu as pltpu

PHI_SIZE = 512


def _round_up(n, m):
    return ((n + m - 1) // m) * m


def _wnet_kernel(x_ref, w_ref, b_ref, o_ref):
    # x_ref: (tb, IN) VMEM    w_ref: (IN, 1) VMEM (resident)    b_ref: (1,) SMEM
    # o_ref: (tb, 1) VMEM, f32
    # The big operand x keeps its contraction dim (IN) on lanes, so no XLU
    # transpose of the (tb, IN) tile is needed to feed the MXU.
    y = jnp.dot(x_ref[...], w_ref[...], preferred_element_type=jnp.float32)
    o_ref[...] = y + b_ref[0]


def wnet_forward(x, w, b, *, tb=4096, vmem_limit_bytes=48 * 1024 * 1024):
    """Forward pass of wNet: y = x @ w.T + b, returned as (B, 1) float32.

    x: (B, IN) activations. f32 or bf16 — bf16 halves HBM traffic (the true
       bottleneck) while accumulation stays f32.
    w: (1, IN) weight in nn.Linear layout (out_features=1, in_features=IN).
    b: (1,)    bias.
    tb: batch-tile rows per grid step. IN is never tiled (each x block must
        remain one contiguous tb*IN*itemsize HBM read).
    """
    B, IN = x.shape
    assert w.shape == (1, IN), "weight must be (1, in_features) like nn.Linear"

    # Tiny, free transforms: (1, IN) -> (IN, 1) weight column in the activation
    # dtype; f32 scalar bias for SMEM.
    w_col = jnp.asarray(w, x.dtype).reshape(IN, 1)
    b = jnp.asarray(b, jnp.float32).reshape((1,))

    # Batch tile: multiple of 128 (sublane/lane friendly), clamped to the
    # 128-rounded batch. No padding of x — pl.cdiv handles the ragged edge.
    b128 = _round_up(B, 128)
    tb = max(128, min(_round_up(tb, 128), b128))
    # v7x has 2 TensorCores; give the "parallel" batch axis >= 2 tiles when
    # the batch is big enough so both cores get work (harmless elsewhere).
    if pl.cdiv(B, tb) < 2 and b128 >= 256:
        tb = _round_up(pl.cdiv(b128, 2), 128)
    num_tiles = pl.cdiv(B, tb)

    itemsize = jnp.dtype(x.dtype).itemsize
    cost = pl.CostEstimate(
        flops=2 * B * IN,
        transcendentals=0,
        bytes_accessed=B * IN * itemsize + IN * itemsize + B * 4 + 4,
    )

    y = pl.pallas_call(
        _wnet_kernel,
        out_shape=jax.ShapeDtypeStruct((B, 1), jnp.float32),
        grid_spec=pltpu.PrefetchScalarGridSpec(
            num_scalar_prefetch=0,
            grid=(num_tiles,),
            in_specs=[
                pl.BlockSpec((tb, IN), lambda i: (i, 0)),            # streamed x tile
                pl.BlockSpec((IN, 1), lambda i: (0, 0)),             # resident weight col
                pl.BlockSpec(memory_space=pltpu.MemorySpace.SMEM),   # scalar bias
            ],
            out_specs=pl.BlockSpec((tb, 1), lambda i: (i, 0)),
        ),
        compiler_params=pltpu.CompilerParams(
            dimension_semantics=("parallel",),
            vmem_limit_bytes=vmem_limit_bytes,
        ),
        cost_estimate=cost,
    )(x, w_col, b)

    return y


def _reference(x, w, b):
    return x @ w.T + b.reshape(1, 1)


if __name__ == "__main__":
    key = jax.random.PRNGKey(0)
    k_x, k_w, k_b, k_x2 = jax.random.split(key, 4)

    IN = PHI_SIZE

    # nn.Linear-style init: weight (1, IN), bias (1,).
    bound = 1.0 / (IN ** 0.5)
    w = jax.random.uniform(k_w, (1, IN), jnp.float32, -bound, bound)
    b = jax.random.uniform(k_b, (1,), jnp.float32, -bound, bound)

    # Small batch (single tile).
    B = 16
    x = jax.random.normal(k_x, (B, IN), jnp.float32)
    y = jax.block_until_ready(wnet_forward(x, w, b))
    y_ref = _reference(x, w, b)
    assert y.shape == (B, 1)
    assert y.dtype == jnp.float32
    assert jnp.allclose(y, y_ref, atol=1e-5, rtol=1e-5), "f32 mismatch vs reference"

    # Ragged batch (B not a multiple of the tile): exercises the un-padded
    # edge-block path and the >=2-tile split.
    B2 = 300
    x2 = jax.random.normal(k_x2, (B2, IN), jnp.float32)
    y2 = jax.block_until_ready(wnet_forward(x2, w, b))
    y2_ref = _reference(x2, w, b)
    assert y2.shape == (B2, 1)
    assert jnp.allclose(y2, y2_ref, atol=1e-5, rtol=1e-5), "ragged-batch mismatch"

    # bf16 activation streaming (f32 accumulate, f32 output).
    x_bf = x.astype(jnp.bfloat16)
    y_bf = jax.block_until_ready(wnet_forward(x_bf, w, b))
    y_bf_ref = _reference(x_bf.astype(jnp.float32), w, b)
    assert y_bf.dtype == jnp.float32
    assert jnp.allclose(y_bf, y_bf_ref, atol=1e-2, rtol=1e-2), "bf16 mismatch"

    print("KERNEL_OK")
</pallas_src>

<mosaic_0001>
module attributes {stable_mosaic.version = 11 : i64} {
  func.func @_wnet_kernel(%arg0: i32, %arg1: memref<128x512xf32, #tpu.memory_space<vmem>>, %arg2: memref<512x1xf32, #tpu.memory_space<vmem>>, %arg3: memref<1xf32, #tpu.memory_space<smem>>, %arg4: memref<128x1xf32, #tpu.memory_space<vmem>>) attributes {dimension_semantics = [#tpu.dimension_semantics<parallel>], iteration_bounds = array<i64: 1>, scalar_prefetch = 0 : i64, scratch_operands = 0 : i64, tpu.core_type = #tpu.core_type<tc>, window_params = [{transform_indices = @transform_0, window_bounds = array<i64: 128, 512>}, {pipeline_mode = #tpu.pipeline_mode<synchronous>, transform_indices = @transform_1, window_bounds = array<i64: 512, 1>}, {transform_indices = @transform_2, window_bounds = array<i64: 1>}, {transform_indices = @transform_3, window_bounds = array<i64: 128, 1>}]} {
    %c0 = arith.constant 0 : index
    %c0_0 = arith.constant 0 : index
    %0 = vector.load %arg1[%c0, %c0_0] : memref<128x512xf32, #tpu.memory_space<vmem>>, vector<128x512xf32>
    %c0_1 = arith.constant 0 : index
    %c0_2 = arith.constant 0 : index
    %1 = vector.load %arg2[%c0_1, %c0_2] : memref<512x1xf32, #tpu.memory_space<vmem>>, vector<512x1xf32>
    %cst = arith.constant dense<0.000000e+00> : vector<128x1xf32>
    %2 = tpu.matmul %0, %1, %cst {dimension_numbers = #tpu.dot_dimension_numbers<[1], [0], [0], [1], [0, 0, 1, 1], [], []>} : vector<128x512xf32>, vector<512x1xf32>, vector<128x1xf32> -> vector<128x1xf32>
    %c0_3 = arith.constant 0 : index
    %3 = memref.load %arg3[%c0_3] : memref<1xf32, #tpu.memory_space<smem>>
    %4 = vector.broadcast %3 : f32 to vector<128x1xf32>
    %5 = arith.addf %2, %4 : vector<128x1xf32>
    %c0_4 = arith.constant 0 : index
    %c0_5 = arith.constant 0 : index
    %6 = vector.load %arg4[%c0_4, %c0_5] : memref<128x1xf32, #tpu.memory_space<vmem>>, vector<128x1xf32>
    tpu.vector_store %arg4[%c0_4, %c0_5], %5 {strides = array<i32>} : memref<128x1xf32, #tpu.memory_space<vmem>>, vector<128x1xf32>,
    return
  }
  func.func @transform_0(%arg0: i32) -> (i32, i32) {
    %c0_i32 = arith.constant 0 : i32
    %c0_i32_0 = arith.constant 0 : i32
    return %arg0, %c0_i32 : i32, i32
  }
  func.func @transform_1(%arg0: i32) -> (i32, i32) {
    %c0_i32 = arith.constant 0 : i32
    %c0_i32_0 = arith.constant 0 : i32
    %c0_i32_1 = arith.constant 0 : i32
    return %c0_i32, %c0_i32_0 : i32, i32
  }
  func.func @transform_2(%arg0: i32) -> i32 {
    %c0_i32 = arith.constant 0 : i32
    %c0_i32_0 = arith.constant 0 : i32
    return %c0_i32 : i32
  }
  func.func @transform_3(%arg0: i32) -> (i32, i32) {
    %c0_i32 = arith.constant 0 : i32
    %c0_i32_0 = arith.constant 0 : i32
    return %arg0, %c0_i32 : i32, i32
  }
}

</mosaic_0001>

<bundles_post_ra>
// kernel: tpu_custom_call.1
= control target key start
LH: loop header
LB: loop body
LE: loop exit
PB: predicated region body
PF: predicated region fallthrough
CT: control target
= control target key end

     0   :  { %vm435_vm0 = vcmask 7168   ;;  %s1133_s0 = inlined_call_operand.vmem [shape: f32[16,512], index: 0, kind: input, shape index: {}]   ;;  %s1134_s1 = inlined_call_operand.vmem [shape: f32[512,1], index: 1, kind: input, shape index: {}]   ;;  %s1135_s2 = inlined_call_operand.<no memory space> [shape: f32[1], index: 2, kind: input, shape index: {}]   ;;  %s1136_s3 = inlined_call_operand.vmem [shape: f32[16,1], index: 3, kind: output, shape index: {}]  }
   0x1   :  { %v95_v0 = vld [vmem:[%s1134_s1 + $0x80] sm:$0xff]  ;;  %v96_v1 = vld [vmem:[%s1134_s1 + $0x88] sm:$0xff]  ;;  %v97_v11 = vld [vmem:[%s1134_s1 + $0x90] sm:$0xff] }
   0x2   :  { %v79_v2 = vld [vmem:[%s1134_s1] sm:$0xff]  ;;  %v656_v3 = vpack.c.bf16 %v96_v1, %v95_v0  ;;  %v80_v4 = vld [vmem:[%s1134_s1 + $0x8] sm:$0xff]  ;;  %v98_v13 = vld [vmem:[%s1134_s1 + $0x98] sm:$0xff] }
   0x3   :  { %v127_v5 = vld [vmem:[%s1134_s1 + $0x180] sm:$0xff]  ;;  %v128_v6 = vld [vmem:[%s1134_s1 + $0x188] sm:$0xff]  ;;  %v658_v7 = vpack.c.bf16 %v80_v4, %v79_v2  ;;  %v81_v14 = vld [vmem:[%s1134_s1 + $0x10] sm:$0xff]  ;;  %v660_v16 = vpack.c.bf16 %v98_v13, %v97_v11 }
   0x4   :  { %v688_v8 = vpack.c.bf16 %v128_v6, %v127_v5  ;;  %v111_v9 = vld [vmem:[%s1134_s1 + $0x100] sm:$0xff]  ;;  %v112_v10 = vld [vmem:[%s1134_s1 + $0x108] sm:$0xff]  ;;  %657 = vmatprep.subr.bf16.mxu0 %v656_v3  ;;  %v82_v15 = vld [vmem:[%s1134_s1 + $0x18] sm:$0xff] }
   0x5   :  { %v690_v12 = vpack.c.bf16 %v112_v10, %v111_v9  ;;  %659 = vmatpush3.bf16.msra.mxu0 %v658_v7  ;;  %v662_v17 = vpack.c.bf16 %v82_v15, %v81_v14  ;;  %v129_v18 = vld [vmem:[%s1134_s1 + $0x190] sm:$0xff]  ;;  %v130_v19 = vld [vmem:[%s1134_s1 + $0x198] sm:$0xff]  ;;  %v99_v23 = vld [vmem:[%s1134_s1 + $0xa0] sm:$0xff] }
   0x6   :  { %689 = vmatprep.subr.bf16.mxu1 %v688_v8  ;;  %v113_v20 = vld [vmem:[%s1134_s1 + $0x110] sm:$0xff]  ;;  %v692_v21 = vpack.c.bf16 %v130_v19, %v129_v18  ;;  %v114_v22 = vld [vmem:[%s1134_s1 + $0x118] sm:$0xff]  ;;  %v100_v24 = vld [vmem:[%s1134_s1 + $0xa8] sm:$0xff]  ;;  %661 = vmatprep.subr.bf16.mxu0 %v660_v16 }
   0x7   :  { %691 = vmatpush3.bf16.msra.mxu1 %v690_v12  ;;  %v694_v25 = vpack.c.bf16 %v114_v22, %v113_v20  ;;  %v664_v26 = vpack.c.bf16 %v100_v24, %v99_v23  ;;  %v83_v27 = vld [vmem:[%s1134_s1 + $0x20] sm:$0xff]  ;;  %v84_v28 = vld [vmem:[%s1134_s1 + $0x28] sm:$0xff]  ;;  %v101_v35 = vld [vmem:[%s1134_s1 + $0xb0] sm:$0xff] }
   0x8   :  { %v131_v29 = vld [vmem:[%s1134_s1 + $0x1a0] sm:$0xff]  ;;  %693 = vmatprep.subr.bf16.mxu1 %v692_v21  ;;  %v132_v30 = vld [vmem:[%s1134_s1 + $0x1a8] sm:$0xff]  ;;  %v666_v33 = vpack.c.bf16 %v84_v28, %v83_v27  ;;  %v102_v36 = vld [vmem:[%s1134_s1 + $0xb8] sm:$0xff] }
   0x9   :  { %v115_v31 = vld [vmem:[%s1134_s1 + $0x120] sm:$0xff]  ;;  %v116_v32 = vld [vmem:[%s1134_s1 + $0x128] sm:$0xff]  ;;  %663 = vmatpush3.bf16.msra.mxu0 %v662_v17  ;;  %v696_v34 = vpack.c.bf16 %v132_v30, %v131_v29  ;;  %v85_v37 = vld [vmem:[%s1134_s1 + $0x30] sm:$0xff]  ;;  %v668_v39 = vpack.c.bf16 %v102_v36, %v101_v35 }
   0xa   :  { %665 = vmatprep.subr.bf16.mxu0 %v664_v26  ;;  %v698_v38 = vpack.c.bf16 %v116_v32, %v115_v31  ;;  %v86_v40 = vld [vmem:[%s1134_s1 + $0x38] sm:$0xff]  ;;  %v133_v41 = vld [vmem:[%s1134_s1 + $0x1b0] sm:$0xff]  ;;  %v103_v46 = vld [vmem:[%s1134_s1 + $0xc0] sm:$0xff] }
   0xb   :  { %695 = vmatpush3.bf16.msra.mxu1 %v694_v25  ;;  %v134_v42 = vld [vmem:[%s1134_s1 + $0x1b8] sm:$0xff]  ;;  %v117_v44 = vld [vmem:[%s1134_s1 + $0x130] sm:$0xff]  ;;  %v104_v47 = vld [vmem:[%s1134_s1 + $0xc8] sm:$0xff]  ;;  %v670_v48 = vpack.c.bf16 %v86_v40, %v85_v37 }
   0xc   :  { %697 = vmatprep.subr.bf16.mxu1 %v696_v34  ;;  %v700_v43 = vpack.c.bf16 %v134_v42, %v133_v41  ;;  %v118_v45 = vld [vmem:[%s1134_s1 + $0x138] sm:$0xff]  ;;  %v135_v49 = vld [vmem:[%s1134_s1 + $0x1c0] sm:$0xff]  ;;  %v136_v50 = vld [vmem:[%s1134_s1 + $0x1c8] sm:$0xff]  ;;  %v672_v52 = vpack.c.bf16 %v104_v47, %v103_v46 }
   0xd   :  { %667 = vmatpush3.bf16.msra.mxu0 %v666_v33  ;;  %v702_v51 = vpack.c.bf16 %v118_v45, %v117_v44  ;;  %v87_v53 = vld [vmem:[%s1134_s1 + $0x40] sm:$0xff]  ;;  %v88_v54 = vld [vmem:[%s1134_s1 + $0x48] sm:$0xff]  ;;  %v704_v56 = vpack.c.bf16 %v136_v50, %v135_v49  ;;  %v105_v58 = vld [vmem:[%s1134_s1 + $0xd0] sm:$0xff] }
   0xe   :  { %669 = vmatprep.subr.bf16.mxu0 %v668_v39  ;;  %v119_v55 = vld [vmem:[%s1134_s1 + $0x140] sm:$0xff]  ;;  %v120_v57 = vld [vmem:[%s1134_s1 + $0x148] sm:$0xff]  ;;  %v106_v59 = vld [vmem:[%s1134_s1 + $0xd8] sm:$0xff]  ;;  %v674_v62 = vpack.c.bf16 %v88_v54, %v87_v53 }
   0xf   :  { %699 = vmatpush3.bf16.msra.mxu1 %v698_v38  ;;  %v137_v60 = vld [vmem:[%s1134_s1 + $0x1d0] sm:$0xff]  ;;  %v138_v61 = vld [vmem:[%s1134_s1 + $0x1d8] sm:$0xff]  ;;  %v706_v63 = vpack.c.bf16 %v120_v57, %v119_v55  ;;  %v676_v0 = vpack.c.bf16 %v106_v59, %v105_v58  ;;  %v107_v6 = vld [vmem:[%s1134_s1 + $0xe0] sm:$0xff] }
  0x10   :  { %701 = vmatprep.subr.bf16.mxu1 %v700_v43  ;;  %v89_v1 = vld [vmem:[%s1134_s1 + $0x50] sm:$0xff]  ;;  %v90_v2 = vld [vmem:[%s1134_s1 + $0x58] sm:$0xff]  ;;  %v708_v4 = vpack.c.bf16 %v138_v61, %v137_v60  ;;  %v108_v7 = vld [vmem:[%s1134_s1 + $0xe8] sm:$0xff] }
  0x11   :  { %671 = vmatpush3.bf16.msra.mxu0 %v670_v48  ;;  %v121_v3 = vld [vmem:[%s1134_s1 + $0x150] sm:$0xff]  ;;  %v122_v5 = vld [vmem:[%s1134_s1 + $0x158] sm:$0xff]  ;;  %v139_v8 = vld [vmem:[%s1134_s1 + $0x1e0] sm:$0xff]  ;;  %v678_v10 = vpack.c.bf16 %v90_v2, %v89_v1  ;;  %v680_v14 = vpack.c.bf16 %v108_v7, %v107_v6 }
  0x12   :  { %673 = vmatprep.subr.bf16.mxu0 %v672_v52  ;;  %v140_v9 = vld [vmem:[%s1134_s1 + $0x1e8] sm:$0xff]  ;;  %v91_v11 = vld [vmem:[%s1134_s1 + $0x60] sm:$0xff]  ;;  %v710_v13 = vpack.c.bf16 %v122_v5, %v121_v3  ;;  %v109_v19 = vld [vmem:[%s1134_s1 + $0xf0] sm:$0xff] }
  0x13   :  { %703 = vmatpush3.bf16.msra.mxu1 %v702_v51  ;;  %v92_v12 = vld [vmem:[%s1134_s1 + $0x68] sm:$0xff]  ;;  %v123_v15 = vld [vmem:[%s1134_s1 + $0x160] sm:$0xff]  ;;  %v712_v18 = vpack.c.bf16 %v140_v9, %v139_v8  ;;  %v110_v20 = vld [vmem:[%s1134_s1 + $0xf8] sm:$0xff] }
  0x14   :  { %705 = vmatprep.subr.bf16.mxu1 %v704_v56  ;;  %v124_v16 = vld [vmem:[%s1134_s1 + $0x168] sm:$0xff]  ;;  %v18_v21 = vld [vmem:[%s1133_s0 + $0x18] sm:$0xff]  ;;  %v141_v22 = vld [vmem:[%s1134_s1 + $0x1f0] sm:$0xff]  ;;  %v682_v24 = vpack.c.bf16 %v92_v12, %v91_v11  ;;  %v684_v26 = vpack.c.bf16 %v110_v20, %v109_v19 }
  0x15   :  { %675 = vmatpush3.bf16.msra.mxu0 %v674_v62  ;;  %v16_v17 = vld [vmem:[%s1133_s0 + $0x8] sm:$0xff]  ;;  %v142_v23 = vld [vmem:[%s1134_s1 + $0x1f8] sm:$0xff]  ;;  %354 = vmatprep.mubr.f32.mxu1 %v18_v21  ;;  %v714_v25 = vpack.c.bf16 %v124_v16, %v123_v15  ;;  %v93_v27 = vld [vmem:[%s1134_s1 + $0x70] sm:$0xff] }
  0x16   :  { %677 = vmatprep.subr.bf16.mxu0 %v676_v0  ;;  %209 = vmatprep.mubr.f32.mxu0 %v16_v17  ;;  %v94_v28 = vld [vmem:[%s1134_s1 + $0x78] sm:$0xff]  ;;  %v716_v29 = vpack.c.bf16 %v142_v23, %v141_v22  ;;  %v125_v30 = vld [vmem:[%s1134_s1 + $0x170] sm:$0xff]  ;;  %v15_v34 = vld [vmem:[%s1133_s0] sm:$0xff] }
  0x17   :  { %707 = vmatpush3.bf16.msra.mxu1 %v706_v63  ;;  %v126_v31 = vld [vmem:[%s1134_s1 + $0x178] sm:$0xff]  ;;  %v686_v32 = vpack.c.bf16 %v94_v28, %v93_v27  ;;  %v17_v35 = vld [vmem:[%s1133_s0 + $0x10] sm:$0xff]  ;;  %v20_v36 = vld [vmem:[%s1133_s0 + $0x28] sm:$0xff] }
  0x18   :  { %709 = vmatprep.subr.bf16.mxu1 %v708_v4  ;;  %v718_v33 = vpack.c.bf16 %v126_v31, %v125_v30  ;;  %v22_v37 = vld [vmem:[%s1133_s0 + $0x38] sm:$0xff]  ;;  %v19_v38 = vld [vmem:[%s1133_s0 + $0x20] sm:$0xff]  ;;  %v21_v39 = vld [vmem:[%s1133_s0 + $0x30] sm:$0xff] }
  0x19   :  { %679 = vmatpush3.bf16.msra.mxu0 %v678_v10  ;;  %v24_v40 = vld [vmem:[%s1133_s0 + $0x48] sm:$0xff]  ;;  %v26_v41 = vld [vmem:[%s1133_s0 + $0x58] sm:$0xff]  ;;  %v23_v42 = vld [vmem:[%s1133_s0 + $0x40] sm:$0xff] }
  0x1a   :  { %681 = vmatprep.subr.bf16.mxu0 %v680_v14  ;;  %v25_v43 = vld [vmem:[%s1133_s0 + $0x50] sm:$0xff]  ;;  %v28_v44 = vld [vmem:[%s1133_s0 + $0x68] sm:$0xff]  ;;  %v30_v45 = vld [vmem:[%s1133_s0 + $0x78] sm:$0xff] }
  0x1b   :  { %711 = vmatpush3.bf16.msra.mxu1 %v710_v13  ;;  %v27_v46 = vld [vmem:[%s1133_s0 + $0x60] sm:$0xff]  ;;  %v29_v47 = vld [vmem:[%s1133_s0 + $0x70] sm:$0xff]  ;;  %v32_v48 = vld [vmem:[%s1133_s0 + $0x88] sm:$0xff] }
  0x1c   :  { %713 = vmatprep.subr.bf16.mxu1 %v712_v18  ;;  %v34_v49 = vld [vmem:[%s1133_s0 + $0x98] sm:$0xff]  ;;  %v31_v50 = vld [vmem:[%s1133_s0 + $0x80] sm:$0xff]  ;;  %v33_v51 = vld [vmem:[%s1133_s0 + $0x90] sm:$0xff] }
  0x1d   :  { %683 = vmatpush3.bf16.msra.mxu0 %v682_v24  ;;  %v36_v52 = vld [vmem:[%s1133_s0 + $0xa8] sm:$0xff]  ;;  %v38_v53 = vld [vmem:[%s1133_s0 + $0xb8] sm:$0xff]  ;;  %v35_v54 = vld [vmem:[%s1133_s0 + $0xa0] sm:$0xff] }
  0x1e   :  { %685 = vmatprep.subr.bf16.mxu0 %v684_v26  ;;  %v37_v55 = vld [vmem:[%s1133_s0 + $0xb0] sm:$0xff]  ;;  %v40_v56 = vld [vmem:[%s1133_s0 + $0xc8] sm:$0xff]  ;;  %v42_v57 = vld [vmem:[%s1133_s0 + $0xd8] sm:$0xff] }
  0x1f   :  { %715 = vmatpush3.bf16.msra.mxu1 %v714_v25  ;;  %v39_v58 = vld [vmem:[%s1133_s0 + $0xc0] sm:$0xff]  ;;  %v41_v59 = vld [vmem:[%s1133_s0 + $0xd0] sm:$0xff]  ;;  %v44_v60 = vld [vmem:[%s1133_s0 + $0xe8] sm:$0xff] }
  0x20   :  { %717 = vmatprep.subr.bf16.mxu1 %v716_v29  ;;  %v46_v61 = vld [vmem:[%s1133_s0 + $0xf8] sm:$0xff]  ;;  %v43_v62 = vld [vmem:[%s1133_s0 + $0xe0] sm:$0xff]  ;;  %v45_v63 = vld [vmem:[%s1133_s0 + $0xf0] sm:$0xff] }
  0x21   :  { %687 = vmatpush3.bf16.msra.mxu0 %v686_v32  ;;  %v48_v0 = vld [vmem:[%s1133_s0 + $0x108] sm:$0xff]  ;;  %v50_v1 = vld [vmem:[%s1133_s0 + $0x118] sm:$0xff]  ;;  %v47_v2 = vld [vmem:[%s1133_s0 + $0x100] sm:$0xff] }
  0x22   :  { %v49_v3 = vld [vmem:[%s1133_s0 + $0x110] sm:$0xff]  ;;  %v52_v4 = vld [vmem:[%s1133_s0 + $0x128] sm:$0xff]  ;;  %v54_v5 = vld [vmem:[%s1133_s0 + $0x138] sm:$0xff] }
  0x23   :  { %719 = vmatpush3.bf16.msra.mxu1 %v718_v33  ;;  %v51_v6 = vld [vmem:[%s1133_s0 + $0x120] sm:$0xff]  ;;  %v53_v7 = vld [vmem:[%s1133_s0 + $0x130] sm:$0xff]  ;;  %v56_v8 = vld [vmem:[%s1133_s0 + $0x148] sm:$0xff]  ;;  %v144_v33 = vstv %s1135_s2 }
  0x24   :  { %210 = vmatmul.mubr.f32.vlgmr.msra.gmra.mrb[0].mxu0 %v15_v34  ;;  %v58_v9 = vld [vmem:[%s1133_s0 + $0x158] sm:$0xff]  ;;  %v55_v10 = vld [vmem:[%s1133_s0 + $0x140] sm:$0xff]  ;;  %v57_v11 = vld [vmem:[%s1133_s0 + $0x150] sm:$0xff] }
  0x25   :  { %214 = vmatprep.mubr.f32.mxu0 %v20_v36  ;;  %v60_v12 = vld [vmem:[%s1133_s0 + $0x168] sm:$0xff]  ;;  %v62_v13 = vld [vmem:[%s1133_s0 + $0x178] sm:$0xff]  ;;  %v59_v14 = vld [vmem:[%s1133_s0 + $0x160] sm:$0xff] }
  0x26   :  { %355 = vmatmul.mubr.f32.vlgmr.msra.gmra.mrb[0].mxu1 %v17_v35  ;;  %v61_v15 = vld [vmem:[%s1133_s0 + $0x170] sm:$0xff]  ;;  %v64_v16 = vld [vmem:[%s1133_s0 + $0x188] sm:$0xff]  ;;  %v66_v17 = vld [vmem:[%s1133_s0 + $0x198] sm:$0xff] }
  0x27   :  { %359 = vmatprep.mubr.f32.mxu1 %v22_v37  ;;  %v63_v18 = vld [vmem:[%s1133_s0 + $0x180] sm:$0xff]  ;;  %v65_v19 = vld [vmem:[%s1133_s0 + $0x190] sm:$0xff]  ;;  %v68_v20 = vld [vmem:[%s1133_s0 + $0x1a8] sm:$0xff] }
  0x28   :  { %215 = vmatmul.mubr.f32.gmra.mrb[2].mxu0 %v19_v38  ;;  %v70_v21 = vld [vmem:[%s1133_s0 + $0x1b8] sm:$0xff]  ;;  %v67_v22 = vld [vmem:[%s1133_s0 + $0x1a0] sm:$0xff]  ;;  %v69_v23 = vld [vmem:[%s1133_s0 + $0x1b0] sm:$0xff] }
  0x29   :  { %219 = vmatprep.mubr.f32.mxu0 %v24_v40  ;;  %v72_v24 = vld [vmem:[%s1133_s0 + $0x1c8] sm:$0xff]  ;;  %v74_v25 = vld [vmem:[%s1133_s0 + $0x1d8] sm:$0xff]  ;;  %v71_v26 = vld [vmem:[%s1133_s0 + $0x1c0] sm:$0xff] }
  0x2a   :  { %360 = vmatmul.mubr.f32.gmra.mrb[2].mxu1 %v21_v39  ;;  %v73_v27 = vld [vmem:[%s1133_s0 + $0x1d0] sm:$0xff]  ;;  %v76_v28 = vld [vmem:[%s1133_s0 + $0x1e8] sm:$0xff]  ;;  %v78_v29 = vld [vmem:[%s1133_s0 + $0x1f8] sm:$0xff] }
  0x2b   :  { %364 = vmatprep.mubr.f32.mxu1 %v26_v41  ;;  %v75_v30 = vld [vmem:[%s1133_s0 + $0x1e0] sm:$0xff]  ;;  %v77_v31 = vld [vmem:[%s1133_s0 + $0x1f0] sm:$0xff] }
  0x2c   :  { %220 = vmatmul.mubr.f32.gmra.mrb[4].mxu0 %v23_v42 }
  0x2d   :  { %224 = vmatprep.mubr.f32.mxu0 %v28_v44 }
  0x2e   :  { %365 = vmatmul.mubr.f32.gmra.mrb[4].mxu1 %v25_v43 }
  0x2f   :  { %369 = vmatprep.mubr.f32.mxu1 %v30_v45 }
  0x30   :  { %225 = vmatmul.mubr.f32.gmra.mrb[6].mxu0 %v27_v46 }
  0x31   :  { %229 = vmatprep.mubr.f32.mxu0 %v32_v48 }
  0x32   :  { %370 = vmatmul.mubr.f32.gmra.mrb[6].mxu1 %v29_v47 }
  0x33   :  { %374 = vmatprep.mubr.f32.mxu1 %v34_v49 }
  0x34   :  { %230 = vmatmul.mubr.f32.gmra.mrb[8].mxu0 %v31_v50 }
  0x35   :  { %234 = vmatprep.mubr.f32.mxu0 %v36_v52 }
  0x36   :  { %375 = vmatmul.mubr.f32.gmra.mrb[8].mxu1 %v33_v51 }
  0x37   :  { %379 = vmatprep.mubr.f32.mxu1 %v38_v53 }
  0x38   :  { %235 = vmatmul.mubr.f32.gmra.mrb[10].mxu0 %v35_v54 }
  0x39   :  { %239 = vmatprep.mubr.f32.mxu0 %v40_v56 }
  0x3a   :  { %380 = vmatmul.mubr.f32.gmra.mrb[10].mxu1 %v37_v55 }
  0x3b   :  { %384 = vmatprep.mubr.f32.mxu1 %v42_v57 }
  0x3c   :  { %240 = vmatmul.mubr.f32.gmra.mrb[12].mxu0 %v39_v58 }
  0x3d   :  { %244 = vmatprep.mubr.f32.mxu0 %v44_v60 }
  0x3e   :  { %385 = vmatmul.mubr.f32.gmra.mrb[12].mxu1 %v41_v59 }
  0x3f   :  { %389 = vmatprep.mubr.f32.mxu1 %v46_v61 }
  0x40   :  { %245 = vmatmul.mubr.f32.gmra.mrb[14].mxu0 %v43_v62 }
  0x41   :  { %249 = vmatprep.mubr.f32.mxu0 %v48_v0 }
  0x42   :  { %390 = vmatmul.mubr.f32.gmra.mrb[14].mxu1 %v45_v63 }
  0x43   :  { %394 = vmatprep.mubr.f32.mxu1 %v50_v1 }
  0x44   :  { %250 = vmatmul.mubr.f32.gmra.mrb[16].mxu0 %v47_v2 }
  0x45   :  { %254 = vmatprep.mubr.f32.mxu0 %v52_v4 }
  0x46   :  { %395 = vmatmul.mubr.f32.gmra.mrb[16].mxu1 %v49_v3 }
  0x47   :  { %399 = vmatprep.mubr.f32.mxu1 %v54_v5 }
  0x48   :  { %255 = vmatmul.mubr.f32.gmra.mrb[18].mxu0 %v51_v6 }
  0x49   :  { %259 = vmatprep.mubr.f32.mxu0 %v56_v8 }
  0x4a   :  { %400 = vmatmul.mubr.f32.gmra.mrb[18].mxu1 %v53_v7 }
  0x4b   :  { %404 = vmatprep.mubr.f32.mxu1 %v58_v9 }
  0x4c   :  { %260 = vmatmul.mubr.f32.gmra.mrb[20].mxu0 %v55_v10 }
  0x4d   :  { %264 = vmatprep.mubr.f32.mxu0 %v60_v12 }
  0x4e   :  { %405 = vmatmul.mubr.f32.gmra.mrb[20].mxu1 %v57_v11 }
  0x4f   :  { %409 = vmatprep.mubr.f32.mxu1 %v62_v13 }
  0x50   :  { %265 = vmatmul.mubr.f32.gmra.mrb[22].mxu0 %v59_v14 }
  0x51   :  { %269 = vmatprep.mubr.f32.mxu0 %v64_v16 }
  0x52   :  { %410 = vmatmul.mubr.f32.gmra.mrb[22].mxu1 %v61_v15 }
  0x53   :  { %414 = vmatprep.mubr.f32.mxu1 %v66_v17 }
  0x54   :  { %270 = vmatmul.mubr.f32.gmra.mrb[24].mxu0 %v63_v18 }
  0x55   :  { %274 = vmatprep.mubr.f32.mxu0 %v68_v20 }
  0x56   :  { %415 = vmatmul.mubr.f32.gmra.mrb[24].mxu1 %v65_v19 }
  0x57   :  { %419 = vmatprep.mubr.f32.mxu1 %v70_v21 }
  0x58   :  { %275 = vmatmul.mubr.f32.gmra.mrb[26].mxu0 %v67_v22 }
  0x59   :  { %279 = vmatprep.mubr.f32.mxu0 %v72_v24 }
  0x5a   :  { %420 = vmatmul.mubr.f32.gmra.mrb[26].mxu1 %v69_v23 }
  0x5b   :  { %424 = vmatprep.mubr.f32.mxu1 %v74_v25 }
  0x5c   :  { %280 = vmatmul.mubr.f32.gmra.mrb[28].mxu0 %v71_v26 }
  0x5d   :  { %284 = vmatprep.mubr.f32.mxu0 %v76_v28 }
  0x5e   :  { %425 = vmatmul.mubr.f32.gmra.mrb[28].mxu1 %v73_v27 }
  0x5f   :  { %429 = vmatprep.mubr.f32.mxu1 %v78_v29 }
  0x60   :  { %285 = vmatmul.mubr.f32.gmra.mrb[30].mxu0 %v75_v30 }
  0x62   :  { %430 = vmatmul.mubr.f32.gmra.mrb[30].mxu1 %v77_v31 }
  0xf7   :  { %v528_v32 = vpop.f32.mrb[0].mxu0 }
  0xf8   :  { %v529_v34 = vpop.f32.mrb[1].mxu0 }
  0xf9   :  { %v608_v35 = vpop.f32.mrb[0].mxu1  ;;  %v530_v36 = vadd.f32 %v529_v34, %v528_v32 }
  0xfa   :  { %v609_v37 = vpop.f32.mrb[1].mxu1 }
  0xfb   :  { %v610_v38 = vadd.f32 %v609_v37, %v608_v35  ;;  %v212_v39 = vadd.f32 %v530_v36, %v144_v33  ;;  %v531_v40 = vpop.f32.mrb[2].mxu0 }
  0xfc   :  { %v532_v41 = vpop.f32.mrb[3].mxu0 }
  0xfd   :  { %v611_v42 = vpop.f32.mrb[2].mxu1  ;;  %v357_v43 = vadd.f32 %v610_v38, %v212_v39  ;;  %v533_v44 = vadd.f32 %v532_v41, %v531_v40 }
  0xfe   :  { %v612_v45 = vpop.f32.mrb[3].mxu1 }
  0xff   :  { %v613_v46 = vadd.f32 %v612_v45, %v611_v42  ;;  %436 = vst.msk [vmem:[#allocation3] sm:$0xff] %vm435_vm0, %v357_v43  ;;  %v217_v47 = vadd.f32 %v533_v44, %v144_v33  ;;  %v534_v48 = vpop.f32.mrb[4].mxu0 }
 0x100   :  { %v535_v49 = vpop.f32.mrb[5].mxu0 }
 0x101   :  { %v614_v50 = vpop.f32.mrb[4].mxu1  ;;  %v362_v51 = vadd.f32 %v613_v46, %v217_v47 }
 0x102   :  { %v615_v52 = vpop.f32.mrb[5].mxu1 }
 0x103   :  { %437 = vst.msk [vmem:[#allocation3 + $0x8] sm:$0xff] %vm435_vm0, %v362_v51  ;;  %v537_v53 = vpop.f32.mrb[6].mxu0 }
 0x104   :  { %v538_v54 = vpop.f32.mrb[7].mxu0 }
 0x105   :  { %v617_v55 = vpop.f32.mrb[6].mxu1 }
 0x106   :  { %v618_v56 = vpop.f32.mrb[7].mxu1  ;;  %v483_v57 = vld [vmem:[#allocation3] sm:$0xff] }
 0x107   :  { %484 = vst [vmem:[%s1136_s3] sm:$0xff] %v483_v57  ;;  %v540_v58 = vpop.f32.mrb[8].mxu0 }
 0x108   :  { %v541_v59 = vpop.f32.mrb[9].mxu0 }
 0x109   :  { %v620_v60 = vpop.f32.mrb[8].mxu1 }
 0x10a   :  { %v621_v61 = vpop.f32.mrb[9].mxu1  ;;  %v485_v62 = vld [vmem:[#allocation3 + $0x8] sm:$0xff] }
 0x10b   :  { %486 = vst [vmem:[%s1136_s3 + $0x8] sm:$0xff] %v485_v62  ;;  %v543_v63 = vpop.f32.mrb[10].mxu0 }
 0x10c   :  { %v544_v0 = vpop.f32.mrb[11].mxu0 }
 0x10d   :  { %v623_v1 = vpop.f32.mrb[10].mxu1 }
 0x10e   :  { %v624_v2 = vpop.f32.mrb[11].mxu1 }
 0x10f   :  { %v546_v3 = vpop.f32.mrb[12].mxu0 }
 0x110   :  { %v547_v4 = vpop.f32.mrb[13].mxu0 }
 0x111   :  { %v626_v5 = vpop.f32.mrb[12].mxu1 }
 0x112   :  { %v627_v6 = vpop.f32.mrb[13].mxu1 }
 0x113   :  { %v549_v7 = vpop.f32.mrb[14].mxu0 }
 0x114   :  { %v550_v8 = vpop.f32.mrb[15].mxu0 }
 0x115   :  { %v629_v9 = vpop.f32.mrb[14].mxu1 }
 0x116   :  { %v630_v10 = vpop.f32.mrb[15].mxu1 }
 0x117   :  { %v552_v11 = vpop.f32.mrb[16].mxu0 }
 0x118   :  { %v553_v12 = vpop.f32.mrb[17].mxu0 }
 0x119   :  { %v632_v13 = vpop.f32.mrb[16].mxu1 }
 0x11a   :  { %v633_v14 = vpop.f32.mrb[17].mxu1 }
 0x11b   :  { %v555_v15 = vpop.f32.mrb[18].mxu0 }
 0x11c   :  { %v556_v16 = vpop.f32.mrb[19].mxu0 }
 0x11d   :  { %v635_v17 = vpop.f32.mrb[18].mxu1 }
 0x11e   :  { %v636_v18 = vpop.f32.mrb[19].mxu1 }
 0x11f   :  { %v558_v19 = vpop.f32.mrb[20].mxu0 }
 0x120   :  { %v559_v20 = vpop.f32.mrb[21].mxu0 }
 0x121   :  { %v638_v21 = vpop.f32.mrb[20].mxu1 }
 0x122   :  { %v639_v22 = vpop.f32.mrb[21].mxu1 }
 0x123   :  { %v561_v23 = vpop.f32.mrb[22].mxu0 }
 0x124   :  { %v562_v24 = vpop.f32.mrb[23].mxu0 }
 0x125   :  { %v641_v25 = vpop.f32.mrb[22].mxu1 }
 0x126   :  { %v642_v26 = vpop.f32.mrb[23].mxu1 }
 0x127   :  { %v564_v27 = vpop.f32.mrb[24].mxu0 }
 0x128   :  { %v565_v28 = vpop.f32.mrb[25].mxu0 }
 0x129   :  { %v644_v29 = vpop.f32.mrb[24].mxu1 }
 0x12a   :  { %v645_v30 = vpop.f32.mrb[25].mxu1 }
 0x12b   :  { %v567_v31 = vpop.f32.mrb[26].mxu0 }
 0x12c   :  { %v568_v32 = vpop.f32.mrb[27].mxu0 }
 0x12d   :  { %v647_v33 = vpop.f32.mrb[26].mxu1 }
 0x12e   :  { %v648_v34 = vpop.f32.mrb[27].mxu1 }
 0x12f   :  { %v570_v35 = vpop.f32.mrb[28].mxu0 }
 0x130   :  { %v571_v36 = vpop.f32.mrb[29].mxu0 }
 0x131   :  { %v650_v37 = vpop.f32.mrb[28].mxu1 }
 0x132   :  { %v651_v38 = vpop.f32.mrb[29].mxu1 }
 0x133   :  { %v573_v39 = vpop.f32.mrb[30].mxu0 }
 0x134   :  { %v574_v40 = vpop.f32.mrb[31].mxu0 }
 0x135   :  { %v653_v41 = vpop.f32.mrb[30].mxu1 }
 0x136   :  { %v654_v42 = vpop.f32.mrb[31].mxu1 }

</bundles_post_ra>
